<compile_context>
chip_gen: v5e
topology: v5e:2x2
jax: 0.10.0
libtpu: 0.0.40
codegen_flags: <defaults>
</compile_context>

<pallas_src>
import functools

import jax
import jax.numpy as jnp
from jax.experimental import pallas as pl
from jax.experimental.pallas import tpu as pltpu

NEG_SLOPE = 0.01       # PyTorch nn.LeakyReLU default negative_slope
HIDDEN = 128
PAD_BIAS = -1e30       # bias for padded logit columns -> exp() underflows to 0
                       # NOTE: only finite in f32; b3 must never be cast to bf16.


def _round_up(x, m):
    return ((x + m - 1) // m) * m


def _leaky_relu(x):
    return jnp.where(x >= 0, x, NEG_SLOPE * x)


def policy_net_kernel(x_ref, w1_ref, b1_ref, w2_ref, b2_ref, w3_ref, b3_ref,
                      out_ref):
    """Forward pass for one batch tile: 3 matmuls + LeakyReLU + softmax.

    x is f32 in VMEM and cast to bf16 here (VPU cast hides under MXU/DMA);
    weights are bf16; accumulation and all elementwise math are f32. Logits
    are padded to a lane-dense width n_pad (pad columns: zero weights and
    bias -1e30 -> exp == 0), but only the first ac_dim probability columns
    are stored (masked vst, tiny writeback).

    Partial trailing batch tiles: rows beyond B hold garbage in the input
    buffer; their (possibly inf/NaN) per-row results are discarded by the
    masked output store, so they never reach HBM.
    """
    ac_dim = out_ref.shape[-1]

    # Layer 1: Linear + LeakyReLU (bf16 MXU inputs, f32 accumulate)
    x_bf = x_ref[...].astype(jnp.bfloat16)
    h = jnp.dot(x_bf, w1_ref[...],
                preferred_element_type=jnp.float32) + b1_ref[...]
    h = _leaky_relu(h)

    # Layer 2: Linear + LeakyReLU
    h = jnp.dot(h.astype(jnp.bfloat16), w2_ref[...],
                preferred_element_type=jnp.float32) + b2_ref[...]
    h = _leaky_relu(h)

    # Layer 3: Linear -> padded logits (lane-dense inside the kernel)
    logits = jnp.dot(h.astype(jnp.bfloat16), w3_ref[...],
                     preferred_element_type=jnp.float32) + b3_ref[...]

    # Numerically stable softmax over the padded last axis (pad cols give 0).
    m = jnp.max(logits, axis=-1, keepdims=True)
    e = jnp.exp(logits - m)
    s = jnp.sum(e, axis=-1, keepdims=True)
    probs = e * pl.reciprocal(s, approx=False)   # exact; EUP/VPU have slack

    # Fused slice: store only the real ac_dim probability columns.
    out_ref[...] = probs[:, :ac_dim].astype(out_ref.dtype)


@functools.partial(jax.jit, static_argnames=("ac_dim", "tb"))
def policy_net_forward(x, params, ac_dim, tb=2048):
    """x: [..., obs_dim] float32 (batched). params: dict with w1,b1,w2,b2,w3,b3
    where weights are bf16 [in, out] and w3/b3 are padded to n_pad columns."""
    assert x.ndim >= 2, "Input must be batched!"
    orig_shape = x.shape
    if x.ndim > 2:
        x = x.reshape(-1, orig_shape[-1])

    B, obs_dim = x.shape
    n_pad = params["w3"].shape[1]          # padded logit width (multiple of 128)

    # Batch tile: multiple of 8 sublanes; sized so the grid has >= 2 steps
    # (both v7x TensorCores busy) while staying <= tb.  For B <= 8 the block
    # simply equals the full batch dim (legal even if B % 8 != 0).
    if B <= 8:
        TB = B
    else:
        TB = min(tb, max(8, _round_up(pl.cdiv(B, 2), 8)))
    grid = (pl.cdiv(B, TB),)
    # NOTE: at TB=2048 the working set is ~6 MiB, well inside every
    # generation's default scoped VMEM; only raise vmem_limit_bytes if tb is
    # pushed well past 2048 on v5e.

    # Resident weight/bias blocks; batch-tiled x/out blocks.
    x_spec = pl.BlockSpec((TB, obs_dim), lambda i: (i, 0))
    w1_spec = pl.BlockSpec((obs_dim, HIDDEN), lambda i: (0, 0))
    b1_spec = pl.BlockSpec((1, HIDDEN), lambda i: (0, 0))
    w2_spec = pl.BlockSpec((HIDDEN, HIDDEN), lambda i: (0, 0))
    b2_spec = pl.BlockSpec((1, HIDDEN), lambda i: (0, 0))
    w3_spec = pl.BlockSpec((HIDDEN, n_pad), lambda i: (0, 0))
    b3_spec = pl.BlockSpec((1, n_pad), lambda i: (0, 0))
    out_spec = pl.BlockSpec((TB, ac_dim), lambda i: (i, 0))

    flops = 2 * B * (obs_dim * HIDDEN + HIDDEN * HIDDEN + HIDDEN * n_pad)
    bytes_accessed = (
        B * obs_dim * 4                                               # x (f32)
        + (obs_dim * HIDDEN + HIDDEN * HIDDEN + HIDDEN * n_pad) * 2   # weights (bf16)
        + (2 * HIDDEN + n_pad) * 4                                    # biases (f32)
        + B * ac_dim * 4                                              # output (f32)
    )

    probs = pl.pallas_call(
        policy_net_kernel,
        out_shape=jax.ShapeDtypeStruct((B, ac_dim), jnp.float32),
        grid=grid,
        in_specs=[x_spec, w1_spec, b1_spec, w2_spec, b2_spec, w3_spec, b3_spec],
        out_specs=out_spec,
        compiler_params=pltpu.CompilerParams(
            dimension_semantics=("parallel",)),
        cost_estimate=pl.CostEstimate(
            flops=flops,
            transcendentals=B * n_pad,
            bytes_accessed=bytes_accessed),
    )(x, params["w1"], params["b1"], params["w2"], params["b2"],
      params["w3"], params["b3"])

    if len(orig_shape) > 2:
        probs = probs.reshape(orig_shape[:-1] + (ac_dim,))
    return probs


def init_params(key, obs_dim, ac_dim, hidden_dim=HIDDEN):
    """PyTorch nn.Linear default init (U(-1/sqrt(fan_in), +1/sqrt(fan_in))).

    Weights are stored pre-cast to bf16 [in, out] (MXU inputs, no per-call
    cast launches); biases stay f32.  w3/b3 are padded to a multiple of 128
    output columns: pad weights are 0 and pad biases are -1e30 so the padded
    logits contribute exp(...) == 0.
    """
    def linear(key, fan_in, fan_out):
        kw, kb = jax.random.split(key)
        bound = 1.0 / jnp.sqrt(fan_in)
        w = jax.random.uniform(kw, (fan_in, fan_out), jnp.float32, -bound, bound)
        b = jax.random.uniform(kb, (1, fan_out), jnp.float32, -bound, bound)
        return w, b

    k1, k2, k3 = jax.random.split(key, 3)
    w1, b1 = linear(k1, obs_dim, hidden_dim)
    w2, b2 = linear(k2, hidden_dim, hidden_dim)
    w3, b3 = linear(k3, hidden_dim, ac_dim)

    n_pad = max(128, _round_up(ac_dim, 128))
    pad = n_pad - ac_dim
    if pad > 0:
        w3 = jnp.concatenate(
            [w3, jnp.zeros((hidden_dim, pad), jnp.float32)], axis=1)
        b3 = jnp.concatenate(
            [b3, jnp.full((1, pad), PAD_BIAS, jnp.float32)], axis=1)

    return {"w1": w1.astype(jnp.bfloat16), "b1": b1,
            "w2": w2.astype(jnp.bfloat16), "b2": b2,
            "w3": w3.astype(jnp.bfloat16), "b3": b3}


def policy_net_reference(x, params, ac_dim):
    """Pure-JAX f32 reference for correctness checking."""
    w1 = params["w1"].astype(jnp.float32)
    w2 = params["w2"].astype(jnp.float32)
    w3 = params["w3"].astype(jnp.float32)
    h = _leaky_relu(x @ w1 + params["b1"])
    h = _leaky_relu(h @ w2 + params["b2"])
    logits = (h @ w3 + params["b3"])[:, :ac_dim]
    return jax.nn.softmax(logits, axis=-1)


if __name__ == "__main__":
    key = jax.random.PRNGKey(0)
    B, obs_dim, ac_dim = 8, 16, 8

    kx, kp = jax.random.split(key)
    x = jax.random.normal(kx, (B, obs_dim), jnp.float32)
    params = init_params(kp, obs_dim, ac_dim)

    probs = policy_net_forward(x, params, ac_dim)
    jax.block_until_ready(probs)

    # sanity: shape, softmax rows sum to ~1, agreement with f32 pure-JAX ref
    # (differences come only from bf16 MXU inputs).
    assert probs.shape == (B, ac_dim)
    row_sums = jnp.sum(probs, axis=-1)
    assert bool(jnp.all(jnp.abs(row_sums - 1.0) < 1e-2)), row_sums
    ref = policy_net_reference(x, params, ac_dim)
    assert bool(jnp.all(jnp.abs(probs - ref) < 3e-2)), jnp.max(jnp.abs(probs - ref))

    print("KERNEL_OK")
</pallas_src>

<mosaic_0001>
module attributes {stable_mosaic.version = 11 : i64} {
  func.func @policy_net_kernel(%arg0: i32, %arg1: memref<8x16xf32, #tpu.memory_space<vmem>>, %arg2: memref<16x128xbf16, #tpu.memory_space<vmem>>, %arg3: memref<1x128xf32, #tpu.memory_space<vmem>>, %arg4: memref<128x128xbf16, #tpu.memory_space<vmem>>, %arg5: memref<1x128xf32, #tpu.memory_space<vmem>>, %arg6: memref<128x128xbf16, #tpu.memory_space<vmem>>, %arg7: memref<1x128xf32, #tpu.memory_space<vmem>>, %arg8: memref<8x8xf32, #tpu.memory_space<vmem>>) attributes {dimension_semantics = [#tpu.dimension_semantics<parallel>], iteration_bounds = array<i64: 1>, scalar_prefetch = 0 : i64, scratch_operands = 0 : i64, tpu.core_type = #tpu.core_type<tc>, window_params = [{transform_indices = @transform_0, window_bounds = array<i64: 8, 16>}, {pipeline_mode = #tpu.pipeline_mode<synchronous>, transform_indices = @transform_1, window_bounds = array<i64: 16, 128>}, {pipeline_mode = #tpu.pipeline_mode<synchronous>, transform_indices = @transform_2, window_bounds = array<i64: 1, 128>}, {pipeline_mode = #tpu.pipeline_mode<synchronous>, transform_indices = @transform_3, window_bounds = array<i64: 128, 128>}, {pipeline_mode = #tpu.pipeline_mode<synchronous>, transform_indices = @transform_4, window_bounds = array<i64: 1, 128>}, {pipeline_mode = #tpu.pipeline_mode<synchronous>, transform_indices = @transform_5, window_bounds = array<i64: 128, 128>}, {pipeline_mode = #tpu.pipeline_mode<synchronous>, transform_indices = @transform_6, window_bounds = array<i64: 1, 128>}, {transform_indices = @transform_7, window_bounds = array<i64: 8, 8>}]} {
    %c0 = arith.constant 0 : index
    %c0_0 = arith.constant 0 : index
    %0 = vector.load %arg1[%c0, %c0_0] : memref<8x16xf32, #tpu.memory_space<vmem>>, vector<8x16xf32>
    %1 = arith.truncf %0 : vector<8x16xf32> to vector<8x16xbf16>
    %c0_1 = arith.constant 0 : index
    %c0_2 = arith.constant 0 : index
    %2 = vector.load %arg2[%c0_1, %c0_2] : memref<16x128xbf16, #tpu.memory_space<vmem>>, vector<16x128xbf16>
    %cst = arith.constant dense<0.000000e+00> : vector<8x128xf32>
    %3 = tpu.matmul %1, %2, %cst {dimension_numbers = #tpu.dot_dimension_numbers<[1], [0], [0], [1], [0, 0, 1, 1], [], []>} : vector<8x16xbf16>, vector<16x128xbf16>, vector<8x128xf32> -> vector<8x128xf32>
    %c0_3 = arith.constant 0 : index
    %c0_4 = arith.constant 0 : index
    %4 = vector.load %arg3[%c0_3, %c0_4] : memref<1x128xf32, #tpu.memory_space<vmem>>, vector<1x128xf32>
    %5 = vector.broadcast %4 : vector<1x128xf32> to vector<8x128xf32>
    %6 = arith.addf %3, %5 : vector<8x128xf32>
    %cst_5 = arith.constant 0.000000e+00 : f32
    %7 = vector.broadcast %cst_5 : f32 to vector<8x128xf32>
    %8 = arith.cmpf oge, %6, %7 : vector<8x128xf32>
    %cst_6 = arith.constant 0.00999999977 : f32
    %9 = vector.broadcast %cst_6 : f32 to vector<8x128xf32>
    %10 = arith.mulf %9, %6 : vector<8x128xf32>
    %11 = arith.select %8, %6, %10 : vector<8x128xi1>, vector<8x128xf32>
    %12 = arith.truncf %11 : vector<8x128xf32> to vector<8x128xbf16>
    %c0_7 = arith.constant 0 : index
    %c0_8 = arith.constant 0 : index
    %13 = vector.load %arg4[%c0_7, %c0_8] : memref<128x128xbf16, #tpu.memory_space<vmem>>, vector<128x128xbf16>
    %cst_9 = arith.constant dense<0.000000e+00> : vector<8x128xf32>
    %14 = tpu.matmul %12, %13, %cst_9 {dimension_numbers = #tpu.dot_dimension_numbers<[1], [0], [0], [1], [0, 0, 1, 1], [], []>} : vector<8x128xbf16>, vector<128x128xbf16>, vector<8x128xf32> -> vector<8x128xf32>
    %c0_10 = arith.constant 0 : index
    %c0_11 = arith.constant 0 : index
    %15 = vector.load %arg5[%c0_10, %c0_11] : memref<1x128xf32, #tpu.memory_space<vmem>>, vector<1x128xf32>
    %16 = vector.broadcast %15 : vector<1x128xf32> to vector<8x128xf32>
    %17 = arith.addf %14, %16 : vector<8x128xf32>
    %cst_12 = arith.constant 0.000000e+00 : f32
    %18 = vector.broadcast %cst_12 : f32 to vector<8x128xf32>
    %19 = arith.cmpf oge, %17, %18 : vector<8x128xf32>
    %cst_13 = arith.constant 0.00999999977 : f32
    %20 = vector.broadcast %cst_13 : f32 to vector<8x128xf32>
    %21 = arith.mulf %20, %17 : vector<8x128xf32>
    %22 = arith.select %19, %17, %21 : vector<8x128xi1>, vector<8x128xf32>
    %23 = arith.truncf %22 : vector<8x128xf32> to vector<8x128xbf16>
    %c0_14 = arith.constant 0 : index
    %c0_15 = arith.constant 0 : index
    %24 = vector.load %arg6[%c0_14, %c0_15] : memref<128x128xbf16, #tpu.memory_space<vmem>>, vector<128x128xbf16>
    %cst_16 = arith.constant dense<0.000000e+00> : vector<8x128xf32>
    %25 = tpu.matmul %23, %24, %cst_16 {dimension_numbers = #tpu.dot_dimension_numbers<[1], [0], [0], [1], [0, 0, 1, 1], [], []>} : vector<8x128xbf16>, vector<128x128xbf16>, vector<8x128xf32> -> vector<8x128xf32>
    %c0_17 = arith.constant 0 : index
    %c0_18 = arith.constant 0 : index
    %26 = vector.load %arg7[%c0_17, %c0_18] : memref<1x128xf32, #tpu.memory_space<vmem>>, vector<1x128xf32>
    %27 = vector.broadcast %26 : vector<1x128xf32> to vector<8x128xf32>
    %28 = arith.addf %25, %27 : vector<8x128xf32>
    %cst_19 = arith.constant dense<0xFF800000> : vector<8xf32>
    %29 = vector.multi_reduction <maximumf>, %28, %cst_19 [1] : vector<8x128xf32> to vector<8xf32>
    %30 = vector.shape_cast %29 : vector<8xf32> to vector<8x1xf32>
    %31 = vector.broadcast %30 : vector<8x1xf32> to vector<8x128xf32>
    %32 = arith.subf %28, %31 : vector<8x128xf32>
    %33 = math.exp %32 : vector<8x128xf32>
    %cst_20 = arith.constant dense<0.000000e+00> : vector<8xf32>
    %34 = vector.multi_reduction <add>, %33, %cst_20 [1] : vector<8x128xf32> to vector<8xf32>
    %35 = vector.shape_cast %34 : vector<8xf32> to vector<8x1xf32>
    %36 = tpu.reciprocal %35 : vector<8x1xf32> -> vector<8x1xf32>
    %37 = vector.broadcast %36 : vector<8x1xf32> to vector<8x128xf32>
    %38 = arith.mulf %33, %37 : vector<8x128xf32>
    %39 = vector.extract_strided_slice %38 {offsets = [0, 0], sizes = [8, 8], strides = [1, 1]} : vector<8x128xf32> to vector<8x8xf32>
    %c0_21 = arith.constant 0 : index
    %c0_22 = arith.constant 0 : index
    %40 = vector.load %arg8[%c0_21, %c0_22] : memref<8x8xf32, #tpu.memory_space<vmem>>, vector<8x8xf32>
    tpu.vector_store %arg8[%c0_21, %c0_22], %39 {strides = array<i32>} : memref<8x8xf32, #tpu.memory_space<vmem>>, vector<8x8xf32>,
    return
  }
  func.func @transform_0(%arg0: i32) -> (i32, i32) {
    %c0_i32 = arith.constant 0 : i32
    %c0_i32_0 = arith.constant 0 : i32
    return %arg0, %c0_i32 : i32, i32
  }
  func.func @transform_1(%arg0: i32) -> (i32, i32) {
    %c0_i32 = arith.constant 0 : i32
    %c0_i32_0 = arith.constant 0 : i32
    %c0_i32_1 = arith.constant 0 : i32
    return %c0_i32, %c0_i32_0 : i32, i32
  }
  func.func @transform_2(%arg0: i32) -> (i32, i32) {
    %c0_i32 = arith.constant 0 : i32
    %c0_i32_0 = arith.constant 0 : i32
    %c0_i32_1 = arith.constant 0 : i32
    return %c0_i32, %c0_i32_0 : i32, i32
  }
  func.func @transform_3(%arg0: i32) -> (i32, i32) {
    %c0_i32 = arith.constant 0 : i32
    %c0_i32_0 = arith.constant 0 : i32
    %c0_i32_1 = arith.constant 0 : i32
    return %c0_i32, %c0_i32_0 : i32, i32
  }
  func.func @transform_4(%arg0: i32) -> (i32, i32) {
    %c0_i32 = arith.constant 0 : i32
    %c0_i32_0 = arith.constant 0 : i32
    %c0_i32_1 = arith.constant 0 : i32
    return %c0_i32, %c0_i32_0 : i32, i32
  }
  func.func @transform_5(%arg0: i32) -> (i32, i32) {
    %c0_i32 = arith.constant 0 : i32
    %c0_i32_0 = arith.constant 0 : i32
    %c0_i32_1 = arith.constant 0 : i32
    return %c0_i32, %c0_i32_0 : i32, i32
  }
  func.func @transform_6(%arg0: i32) -> (i32, i32) {
    %c0_i32 = arith.constant 0 : i32
    %c0_i32_0 = arith.constant 0 : i32
    %c0_i32_1 = arith.constant 0 : i32
    return %c0_i32, %c0_i32_0 : i32, i32
  }
  func.func @transform_7(%arg0: i32) -> (i32, i32) {
    %c0_i32 = arith.constant 0 : i32
    %c0_i32_0 = arith.constant 0 : i32
    return %arg0, %c0_i32 : i32, i32
  }
}

</mosaic_0001>

<bundles_post_ra>
// kernel: policy_net_forward.1
= control target key start
LH: loop header
LB: loop body
LE: loop exit
PB: predicated region body
PF: predicated region fallthrough
CT: control target
= control target key end

     0   :  { %12 = vsyncpa [#allocation3], 0  ;;  %s671_s0 = inlined_call_operand.hbm [shape: f32[8,16], index: 0, kind: input, shape index: {}]   ;;  %s672_s1 = inlined_call_operand.hbm [shape: bf16[16,128], index: 1, kind: input, shape index: {}]   ;;  %s673_s2 = inlined_call_operand.hbm [shape: f32[1,128], index: 2, kind: input, shape index: {}]   ;;  %s674_s3 = inlined_call_operand.hbm [shape: bf16[128,128], index: 3, kind: input, shape index: {}]   ;;  %s675_s4 = inlined_call_operand.vmem [shape: f32[1,128], index: 4, kind: input, shape index: {}]   ;;  %s676_s5 = inlined_call_operand.hbm [shape: bf16[128,128], index: 5, kind: input, shape index: {}]   ;;  %s677_s6 = inlined_call_operand.vmem [shape: f32[1,128], index: 6, kind: input, shape index: {}]   ;;  %s678_s7 = inlined_call_operand.hbm [shape: f32[8,8], index: 7, kind: output, shape index: {}]  }
   0x1   :  { %13 = vsyncpa [#allocation6], 0 }
   0x2   :  { %14 = vsyncpa [#allocation9], 0  ;;  %s31_s26 = sshll.u32 %s672_s1, 4  ;;  %s32_s26 = int_to_ptr.hbm [resolvable:$true] %s31_s26 }
   0x3   :  { %15 = vsyncpa [#allocation4], 0  ;;  %s599_s27 = smov [#allocation5]   ;;  %s55_s8 = sshll.u32 %s674_s3, 4  ;;  %s56_s8 = int_to_ptr.hbm [resolvable:$true] %s55_s8 }
   0x4   :  { %s33_s28 = sshll.u32 %s599_s27, 4  ;;  %s600_s9 = smov 64   ;;  %s34_s28 = int_to_ptr.vmem [resolvable:$true] %s33_s28 }
   0x5   :  { %s601_s10 = smov 4   ;;  %s602_s11 = smov [#allocation8]  }
   0x6   :  { %39 = dma.hbm_to_vmem [thread:$0]  %s32_s26, 128, %s34_s28, [#allocation6], %s600_s9, %s600_s9, %s601_s10  }
   0x7   :  { %s57_s12 = sshll.u32 %s602_s11, 4  ;;  %s21_s15 = sshll.u32 %s671_s0, 4  ;;  %s58_s12 = int_to_ptr.vmem [resolvable:$true] %s57_s12  ;;  %s22_s15 = int_to_ptr.hbm [resolvable:$true] %s21_s15 }
   0x8   :  { %63 = dma.hbm_to_vmem [thread:$0]  %s56_s8, 1024, %s58_s12, [#allocation9], %s600_s9, %s600_s9, %s601_s10  }
   0x9   :  { %s45_s17 = sshll.u32 %s673_s2, 4  ;;  %s603_s18 = smov [#allocation2]   ;;  %s46_s17 = int_to_ptr.hbm [resolvable:$true] %s45_s17 }
   0xa   :  { %s23_s19 = sshll.u32 %s603_s18, 4  ;;  %s604_s3 = smov [#allocation7]   ;;  %s24_s19 = int_to_ptr.vmem [resolvable:$true] %s23_s19 }
   0xb   :  { %26 = dma.hbm_to_vmem [thread:$0]  %s22_s15, 128, %s24_s19, [#allocation3]  }
   0xc   :  { %s47_s20 = sshll.u32 %s604_s3, 4  ;;  %s70_s23 = sshll.u32 %s676_s5, 4  ;;  %s48_s20 = int_to_ptr.vmem [resolvable:$true] %s47_s20  ;;  %s71_s23 = int_to_ptr.hbm [resolvable:$true] %s70_s23 }
   0xd   :  { %50 = dma.hbm_to_vmem [thread:$0]  %s46_s17, 16, %s48_s20, [#allocation6]  }
   0xe   :  { %s605_s0 = smov [#allocation10]  }
   0xf   :  { %s72_s24 = sshll.u32 %s605_s0, 4  ;;  %s73_s24 = int_to_ptr.vmem [resolvable:$true] %s72_s24 }
  0x10   :  { %78 = dma.hbm_to_vmem [thread:$0]  %s71_s23, 1024, %s73_s24, [#allocation9], %s600_s9, %s600_s9, %s601_s10  }
  0x11   :  { %591 = dma.done.wait [#allocation3], 128  }
  0x12   :  { %592 = vsyncadd [#allocation3], 4294967168 }
  0x13   :  { %593 = dma.done.wait [#allocation6], 144  }
  0x14   :  { %594 = vsyncadd [#allocation6], 4294967152 }
  0x15   :  { %595 = dma.done.wait [#allocation9], 2048  }
  0x16   :  { %596 = vsyncadd [#allocation9], 4294965248  ;;  %v415_v0 = vld [vmem:[#allocation5] sm:$0xff]  ;;  %v102_v1 = vld [vmem:[#allocation2] sm:$0xff]  ;;  %vm116_vm0 = vcmask 130048   ;;  %s334_s29 = sshll.u32 %s678_s7, 4  ;;  %s335_s29 = int_to_ptr.hbm [resolvable:$true] %s334_s29 }
  0x17   :  { %v423_v2 = vld [vmem:[#allocation8 + $0x38] sm:$0xff]  ;;  %v103_v3 = vpack.c.bf16 %v102_v1, %v102_v1  ;;  %127 = vmatpush.bf16.msra.mxu0 %v415_v0  ;;  %v422_v4 = vld [vmem:[#allocation8 + $0x30] sm:$0xff]  ;;  %v421_v5 = vld [vmem:[#allocation8 + $0x28] sm:$0xff]  ;;  %vm325_vm7 = vcmask 64512  }
  0x18   :  { %205 = vmatpush.bf16.msra.mxu1 %v423_v2  ;;  %v420_v6 = vld [vmem:[#allocation8 + $0x20] sm:$0xff]  ;;  %v419_v7 = vld [vmem:[#allocation8 + $0x18] sm:$0xff]  ;;  %v418_v8 = vld [vmem:[#allocation8 + $0x10] sm:$0xff] }
  0x19   :  { %v417_v9 = vld [vmem:[#allocation8 + $0x8] sm:$0xff]  ;;  %v416_v10 = vld [vmem:[#allocation8] sm:$0xff]  ;;  %v431_v11 = vld [vmem:[#allocation10 + $0x38] sm:$0xff] }
  0x1a   :  { %350 = vmatmul.msk.bf16.vlgmr.msra.gmra.mxu0 %vm116_vm0, %v103_v3  ;;  %290 = vmatpush.bf16.msra.mxu2 %v431_v11  ;;  %v430_v12 = vld [vmem:[#allocation10 + $0x30] sm:$0xff]  ;;  %v429_v13 = vld [vmem:[#allocation10 + $0x28] sm:$0xff]  ;;  %v428_v14 = vld [vmem:[#allocation10 + $0x20] sm:$0xff] }
  0x1b   :  { %v427_v15 = vld [vmem:[#allocation10 + $0x18] sm:$0xff]  ;;  %v426_v16 = vld [vmem:[#allocation10 + $0x10] sm:$0xff]  ;;  %v425_v24 = vld [vmem:[#allocation10 + $0x8] sm:$0xff] }
  0x1c   :  { %206 = vmatpush.bf16.msra.mxu1 %v422_v4  ;;  %v440_v17 = vld [vmem:[#allocation7] ss:$0 sm:$0xff]  ;;  %v424_v25 = vld [vmem:[#allocation10] sm:$0xff]  ;;  %v441_v26 = vld [vmem:[%s675_s4] ss:$0 sm:$0xff]  ;;  %s606_s4 = smov [#allocation11]  }
  0x1d   :  { %v442_v33 = vld [vmem:[%s677_s6] ss:$0 sm:$0xff]  ;;  %s332_s6 = sshll.u32 %s606_s4, 4  ;;  %s333_s6 = int_to_ptr.vmem [resolvable:$true] %s332_s6 }
  0x1e   :  { %291 = vmatpush.bf16.msra.mxu2 %v430_v12 }
  0x20   :  { %207 = vmatpush.bf16.msra.mxu1 %v421_v5 }
  0x22   :  { %292 = vmatpush.bf16.msra.mxu2 %v429_v13 }
  0x24   :  { %208 = vmatpush.bf16.msra.mxu1 %v420_v6 }
  0x26   :  { %293 = vmatpush.bf16.msra.mxu2 %v428_v14 }
  0x28   :  { %209 = vmatpush.bf16.msra.mxu1 %v419_v7 }
  0x2a   :  { %294 = vmatpush.bf16.msra.mxu2 %v427_v15 }
  0x2c   :  { %210 = vmatpush.bf16.msra.mxu1 %v418_v8 }
  0x2e   :  { %295 = vmatpush.bf16.msra.mxu2 %v426_v16 }
  0x30   :  { %211 = vmatpush.bf16.msra.mxu1 %v417_v9 }
  0x32   :  { %296 = vmatpush.bf16.msra.mxu2 %v425_v24 }
  0x34   :  { %212 = vmatpush.bf16.msra.mxu1 %v416_v10 }
  0x36   :  { %297 = vmatpush.bf16.msra.mxu2 %v424_v25 }
  0x97   :  { %v129_v18 = vpop.f32.mrf.mxu0 }
  0x98   :  { %v130_v19 = vadd.f32 %v440_v17, %v129_v18 }
  0x9a   :  { %v134_v20 = vmul.f32 0.01, %v130_v19  ;;  %vm133_vm1 = vcmp.ge.f32.partialorder %v130_v19, 0.0 }
  0x9c   :  { %v135_v21 = vsel %vm133_vm1, %v130_v19, %v134_v20 }
  0x9d   :  { %v136_v22 = vpack.c.bf16 %v135_v21, %v135_v21 }
  0x9f   :  { %v131_v23 = vpop.f32.mrf.mxu0  ;;  %213 = vmatmul.bf16.vlgmr.msra.gmra.mxu1 %v136_v22 }
 0x11c   :  { %v214_v27 = vpop.f32.mrf.mxu1 }
 0x11d   :  { %v215_v28 = vadd.f32 %v441_v26, %v214_v27 }
 0x11f   :  { %v219_v29 = vmul.f32 0.01, %v215_v28  ;;  %vm218_vm2 = vcmp.ge.f32.partialorder %v215_v28, 0.0 }
 0x121   :  { %v220_v30 = vsel %vm218_vm2, %v215_v28, %v219_v29 }
 0x122   :  { %v221_v31 = vpack.c.bf16 %v220_v30, %v220_v30 }
 0x124   :  { %v216_v32 = vpop.f32.mrf.mxu1  ;;  %298 = vmatmul.bf16.vlgmr.msra.gmra.mxu2 %v221_v31 }
 0x1a7   :  { %v299_v34 = vpop.f32.mrf.mxu2 }
 0x1a8   :  { %v300_v35 = vadd.f32 %v442_v33, %v299_v34 }
 0x1aa   :  { %303 = vmax.xlane.f32.xlu0 %v300_v35 }
 0x1af   :  { %v301_v36 = vpop.f32.mrf.mxu2 }
 0x21d   :  { %v304_v37 = vpop.xlane.xlu0 %303 }
 0x21e   :  { %v305_v38 = vsub.f32 %v300_v35, %v304_v37 }
 0x220   :  { %v306_v39 = vmul.f32 1.442695, %v305_v38 }
 0x222   :  { %443 = vpow2.f32 %v306_v39 }
 0x228   :  { %v444_v40 = vpop.eup %443 }
 0x229   :  { %308 = vadd.xlane.f32.xlu0 %v444_v40 }
 0x29c   :  { %v309_v41 = vpop.xlane.xlu0 %308 }
 0x29d   :  { %445 = vrcp.f32 %v309_v41  ;;  %v321_v45 = vand.u32 2147483648, %v309_v41  ;;  %v319_v47 = vand.u32 2147483647, %v309_v41  ;;  %vm315_vm4 = vweird.f32 %v309_v41 }
 0x29f   :  { %v322_v49 = vor.u32 1.1754944e-38, %v321_v45  ;;  %vm320_vm6 = vcmp.eq.f32.partialorder %v319_v47, 8.507059e+37 }
 0x2a3   :  { %v446_v42 = vpop.eup %445 }
 0x2a4   :  { %v311_v43 = vmul.f32 %v446_v42, %v309_v41  ;;  %vm316_vm3 = vweird.f32 %v446_v42 }
 0x2a5   :  { %vm317_vm5 = vmor %vm315_vm4, %vm316_vm3 }
 0x2a6   :  { %v312_v44 = vsub.f32 1.0, %v311_v43 }
 0x2a8   :  { %v313_v46 = vmul.f32 %v446_v42, %v312_v44 }
 0x2aa   :  { %v314_v48 = vadd.f32 %v446_v42, %v313_v46 }
 0x2ac   :  { %v318_v50 = vsel %vm317_vm5, %v446_v42, %v314_v48 }
 0x2ad   :  { %v323_v51 = vsel %vm320_vm6, %v322_v49, %v318_v50 }
 0x2ae   :  { %v324_v52 = vmul.f32 %v444_v40, %v323_v51 }
 0x2b0   :  { %326 = vst.msk [vmem:[#allocation11] sm:$0xff] %vm325_vm7, %v324_v52 }
 0x2b1   :  { %337 = dma.vmem_to_hbm [thread:$0]  %s333_s6, 128, %s335_s29, [#allocation4]  }
 0x2b2   :  { %597 = dma.done.wait [#allocation4], 128  }
 0x2b3   :  { %598 = vsyncadd [#allocation4], 4294967168 }
 0x2b4   :  { %342 = vsyncpa [#allocation3], 1 }
 0x2b5   :  { %343 = vsyncpa [#allocation6], 1 }
 0x2b6   :  { %344 = vsyncpa [#allocation9], 1 }
 0x2b7   :  { %345 = vsyncpa [#allocation4], 1 }

</bundles_post_ra>
